<compile_context>
chip_gen: v5e
topology: v5e:2x2
jax: 0.10.0
libtpu: 0.0.40
codegen_flags: <defaults>
</compile_context>

<pallas_src>
import jax
import jax.numpy as jnp
from jax.experimental import pallas as pl
from jax.experimental.pallas import tpu as pltpu


def _folded_linear_kernel(params_ref, x_ref, o_ref):
    # params_ref: SMEM f32[3] = [W0, W1, b] with W = w1 @ w2, b = b1 @ w2 + b2.
    # x_ref:      VMEM f32[2, TM, 128]  (feature axis first, batch on rows*lanes)
    # o_ref:      VMEM f32[TM, 128]
    w0 = params_ref[0]
    w1 = params_ref[1]
    b = params_ref[2]
    # Dense (TM, 128) slabs: pure VPU FMAs, fully packed vregs, unmasked stores.
    o_ref[...] = (x_ref[0] * w0 + x_ref[1] * w1 + b).astype(o_ref.dtype)


def _round_up(v, m):
    return (v + m - 1) // m * m


def _default_tile_rows():
    """Per-generation tile height (rows of 128 lanes), multiple of 8.

    Double-buffered VMEM use is ~3072 * TM bytes (input 1024*TM + output
    512*TM, x2 buffers).  8192 -> ~24 MiB (safe on v7x's 64 MiB VMEM);
    32768 -> ~96 MiB (v5e/v6e's 128 MiB VMEM, limit raised below).
    """
    try:
        kind = jax.devices()[0].device_kind.lower()
    except Exception:
        return 8192
    if any(tag in kind for tag in ("v4", "v5", "v6")):
        return 32768
    return 8192  # v7x (64 MiB VMEM) and unknown chips: conservative.


def circle_model_v0(x, w1, b1, w2, b2, *, tile_rows=None):
    """Forward of CircleModelV0.

    x: (N, 2) f32; w1: (2,5); b1: (1,5); w2: (5,1); b2: (1,1)  ->  (N, 1) f32.
    Weights are stored pre-transposed vs. PyTorch (i.e. (in, out)).
    """
    n = x.shape[0]

    # Fold the two activation-free linear layers into a single 2->1 affine map.
    w = (w1 @ w2).reshape(-1)                               # (2,)
    b = (b1 @ w2 + b2).reshape(-1)                          # (1,)
    params = jnp.concatenate([w, b]).astype(jnp.float32)    # (3,) -> SMEM

    if tile_rows is None:
        tile_rows = _default_tile_rows()

    # Rows of 128 lanes needed to cover the batch.
    rows_needed = pl.cdiv(n, 128)
    # Prefer >= 2 grid steps (v7x megacore) when the batch permits; TM must be
    # a multiple of 8 for the (8,128) f32 tiling.
    tm = min(tile_rows, max(8, _round_up(pl.cdiv(rows_needed, 2), 8)))
    tm = max(8, (tm // 8) * 8)
    grid_m = pl.cdiv(rows_needed, tm)
    rows = grid_m * tm
    n_pad = rows * 128

    # Single wrapper pass: transpose + (tile-granular) pad + reshape to dense
    # (2, rows, 128) slabs.  Padded lanes compute y = b and are sliced off.
    xt = x.T.astype(jnp.float32)                            # (2, N)
    if n_pad != n:
        xt = jnp.pad(xt, ((0, 0), (0, n_pad - n)))
    x3 = xt.reshape(2, rows, 128)

    # input block 1024*tm B + output block 512*tm B, double-buffered, + slack.
    vmem_limit = 3072 * tm * 2 // 2 * 2  # = 3072 * tm * 2? keep explicit below
    vmem_limit = (1024 * tm + 512 * tm) * 2 + (4 << 20)

    y = pl.pallas_call(
        _folded_linear_kernel,
        out_shape=jax.ShapeDtypeStruct((rows, 128), jnp.float32),
        grid_spec=pltpu.PrefetchScalarGridSpec(
            num_scalar_prefetch=0,
            grid=(grid_m,),
            in_specs=[
                # 3 folded scalars: whole array in SMEM, no VMEM tile / DMA.
                pl.BlockSpec(memory_space=pltpu.MemorySpace.SMEM),
                # x stream: dense (2, TM, 128) tiles, double-buffered by Pallas.
                pl.BlockSpec((2, tm, 128), lambda i: (0, i, 0)),
            ],
            out_specs=pl.BlockSpec((tm, 128), lambda i: (i, 0)),
        ),
        compiler_params=pltpu.CompilerParams(
            dimension_semantics=("parallel",),   # megacore sharding on v7x
            vmem_limit_bytes=int(vmem_limit),
        ),
    )(params, x3)

    # Back to the PyTorch output shape (N, 1).
    return y.reshape(n_pad)[:n].reshape(n, 1)


if __name__ == "__main__":
    key = jax.random.PRNGKey(0)
    k_x, k_w1, k_b1, k_w2, k_b2 = jax.random.split(key, 5)

    # Small demo: N=2000 exercises padding (2000 -> 2048 lanes) and a 2-step
    # "parallel" grid with TM=8 dense (8,128) slabs.
    N, IN, HID, OUT = 2000, 2, 5, 1

    # Deterministic synthetic parameters (nn.Linear shapes, stored as (in, out)).
    x = jax.random.normal(k_x, (N, IN), dtype=jnp.float32)
    w1 = jax.random.normal(k_w1, (IN, HID), dtype=jnp.float32) * 0.5
    b1 = jax.random.normal(k_b1, (1, HID), dtype=jnp.float32) * 0.1
    w2 = jax.random.normal(k_w2, (HID, OUT), dtype=jnp.float32) * 0.5
    b2 = jax.random.normal(k_b2, (1, OUT), dtype=jnp.float32) * 0.1

    out = circle_model_v0(x, w1, b1, w2, b2)
    out = jax.block_until_ready(out)

    # Reference: same math as the PyTorch forward (unfolded).
    ref = (x @ w1 + b1) @ w2 + b2
    assert out.shape == (N, OUT)
    assert jnp.allclose(out, ref, atol=1e-4, rtol=1e-4)

    print("KERNEL_OK")
</pallas_src>

<mosaic_0001>
module attributes {stable_mosaic.version = 11 : i64} {
  func.func @_folded_linear_kernel(%arg0: i32, %arg1: memref<3xf32, #tpu.memory_space<smem>>, %arg2: memref<2x8x128xf32, #tpu.memory_space<vmem>>, %arg3: memref<8x128xf32, #tpu.memory_space<vmem>>) attributes {dimension_semantics = [#tpu.dimension_semantics<parallel>], iteration_bounds = array<i64: 2>, scalar_prefetch = 0 : i64, scratch_operands = 0 : i64, tpu.core_type = #tpu.core_type<tc>, window_params = [{transform_indices = @transform_0, window_bounds = array<i64: 3>}, {transform_indices = @transform_1, window_bounds = array<i64: 2, 8, 128>}, {transform_indices = @transform_2, window_bounds = array<i64: 8, 128>}]} {
    %c0 = arith.constant 0 : index
    %0 = memref.load %arg1[%c0] : memref<3xf32, #tpu.memory_space<smem>>
    %c1 = arith.constant 1 : index
    %1 = memref.load %arg1[%c1] : memref<3xf32, #tpu.memory_space<smem>>
    %c2 = arith.constant 2 : index
    %2 = memref.load %arg1[%c2] : memref<3xf32, #tpu.memory_space<smem>>
    %c0_0 = arith.constant 0 : index
    %c0_1 = arith.constant 0 : index
    %c0_2 = arith.constant 0 : index
    %3 = vector.load %arg2[%c0_0, %c0_1, %c0_2] : memref<2x8x128xf32, #tpu.memory_space<vmem>>, vector<1x8x128xf32>
    %4 = vector.shape_cast %3 : vector<1x8x128xf32> to vector<8x128xf32>
    %5 = vector.broadcast %0 : f32 to vector<8x128xf32>
    %6 = arith.mulf %4, %5 : vector<8x128xf32>
    %c1_3 = arith.constant 1 : index
    %c0_4 = arith.constant 0 : index
    %c0_5 = arith.constant 0 : index
    %7 = vector.load %arg2[%c1_3, %c0_4, %c0_5] : memref<2x8x128xf32, #tpu.memory_space<vmem>>, vector<1x8x128xf32>
    %8 = vector.shape_cast %7 : vector<1x8x128xf32> to vector<8x128xf32>
    %9 = vector.broadcast %1 : f32 to vector<8x128xf32>
    %10 = arith.mulf %8, %9 : vector<8x128xf32>
    %11 = arith.addf %6, %10 : vector<8x128xf32>
    %12 = vector.broadcast %2 : f32 to vector<8x128xf32>
    %13 = arith.addf %11, %12 : vector<8x128xf32>
    %c0_6 = arith.constant 0 : index
    %c0_7 = arith.constant 0 : index
    %14 = vector.load %arg3[%c0_6, %c0_7] : memref<8x128xf32, #tpu.memory_space<vmem>>, vector<8x128xf32>
    tpu.vector_store %arg3[%c0_6, %c0_7], %13 {strides = array<i32>} : memref<8x128xf32, #tpu.memory_space<vmem>>, vector<8x128xf32>,
    return
  }
  func.func @transform_0(%arg0: i32) -> i32 {
    %c0_i32 = arith.constant 0 : i32
    %c0_i32_0 = arith.constant 0 : i32
    return %c0_i32 : i32
  }
  func.func @transform_1(%arg0: i32) -> (i32, i32, i32) {
    %c0_i32 = arith.constant 0 : i32
    %c0_i32_0 = arith.constant 0 : i32
    %c0_i32_1 = arith.constant 0 : i32
    return %c0_i32, %arg0, %c0_i32_0 : i32, i32, i32
  }
  func.func @transform_2(%arg0: i32) -> (i32, i32) {
    %c0_i32 = arith.constant 0 : i32
    %c0_i32_0 = arith.constant 0 : i32
    return %arg0, %c0_i32 : i32, i32
  }
}

</mosaic_0001>

<bundles_post_ra>
// kernel: tpu_custom_call.1
= control target key start
LH: loop header
LB: loop body
LE: loop exit
PB: predicated region body
PF: predicated region fallthrough
CT: control target
= control target key end

     0   :  { %7 = vsyncpa [#allocation5], 0  ;;  %s645_s0 = inlined_call_operand.hbm [shape: f32[3], index: 0, kind: input, shape index: {}]   ;;  %s646_s1 = inlined_call_operand.hbm [shape: f32[2,16,128], index: 1, kind: input, shape index: {}]   ;;  %s647_s2 = inlined_call_operand.hbm [shape: f32[16,128], index: 2, kind: output, shape index: {}]  }
   0x1   :  { %8 = vsyncpa [#allocation3], 0 }
   0x2   :  { %10 = vsyncpa [#allocation3 + $0x1], 0 }
   0x3   :  { %11 = vsyncpa [#allocation4], 0 }
   0x4   :  { %13 = vsyncpa [#allocation4 + $0x1], 0  ;;  %s502_s9 = smov 0   ;;  %s504_s10 = smov 0  }
   0x5   :  { %s506_s11 = smov 0   ;;  %s508_s12 = smov 0  }
   0x6 LB: > { %s523_s13 = sadd.s32 4294967295, %s481_s12   ;;  %s289_s14 = sadd.s32 4294967294, %s481_s12   ;;  %s481_s12 = sphi %s508_s12, %s658_s12   ;;  %s477_s11 = sphi %s506_s11, %s657_s11   ;;  %s473_s10 = sphi %s504_s10, %s656_s10   ;;  %s469_s9 = sphi %s502_s9, %s655_s9  }
   0x7   : > { %s527_s15 = sadd.s32 1, %s481_s12   ;;  %s47_s16 = sadd.s32 1, %s477_s11 }
   0x8   : > { %s44_s17 = ssub.s32 %s481_s12, %s527_s15  ;;  %p54_p0 = scmp.ne.s32.totalorder %s477_s11, %s473_s10 }
   0x9   : > { %p45_p1 = scmp.eq.s32.totalorder %s44_s17, 0  ;;  %p55_p2 = scmp.eq.s32.totalorder %s481_s12, 0 }
   0xa   : > { %p60_p3 = scmp.ne.s32.totalorder %s473_s10, %s469_s9  ;;  %p61_p4 = scmp.eq.s32.totalorder %s523_s13, 0 }
   0xb   : > { %s539_s18 = scalar_select %p45_p1, %s477_s11, %s47_s16  }
   0xc   : > { %p541_p5 = por %p55_p2, %p54_p0  ;;  %p547_p6 = por %p61_p4, %p60_p3 }
   0xd   : > { %p84_p7 = scmp.eq.s32.totalorder %s523_s13, 1  ;;  %p90_p8 = scmp.eq.s32.totalorder %s289_s14, 1 }
   0xe   : > { %p290_p9 = scmp.ge.s32.totalorder %s481_s12, 1  ;;  %p97_p10 = scmp.lt.s32.totalorder %s481_s12, 3 }
   0xf   : > { %p554_p11 = por %p84_p7, %p54_p0  ;;  %p558_p12 = por %p90_p8, %p60_p3 }
  0x10   : > { %p562_p13 = pnand %p290_p9, %p97_p10  ;;  %s109_s26 = sshll.u32 %s645_s0, 4  ;;  %s110_s26 = int_to_ptr.hbm [resolvable:$true] %s109_s26 }
  0x11   : > { %p327_p2 = scmp.lt.s32.totalorder %s481_s12, 2  ;;  %s120_s27 = sand.u32 1, %s477_s11  }
  0x12   : > { %p314_p1 = pneg %p562_p13  ;;  %s293_s29 = sshll.u32 %s120_s27, 4 }
  0x13   : > { %p578_p3 = pnand %p327_p2, %p541_p5  ;;  %s483_s30 = smov [#allocation2]  }
  0x14   : > { %p315_p7 = pnand %p314_p1, %p61_p4  ;;  %s294_s3 = sshll.u32 %s481_s12, 3 }
  0x15   : > { %s124_s4 = scalar_lea.vmem [#allocation6], %s293_s29  ;;  %s128_s8 = scalar_lea.hbm %s646_s1, %s294_s3 }
  0x16   : > { %317 = dma.hbm_to_smem (!%p315_p7), %s110_s26, 16, %s483_s30, [#allocation5]  }
  0x17   : > { %s131_s5 = sshll.u32 %s124_s4, 4  ;;  %s129_s14 = sshll.u32 %s128_s8, 4  ;;  %s132_s5 = int_to_ptr.vmem [resolvable:$true] %s131_s5  ;;  %s130_s14 = int_to_ptr.hbm [resolvable:$true] %s129_s14 }
  0x18   : > { %s121_s16 = scalar_lea.sflag [#allocation3], %s120_s27  ;;  %s381_s17 = sshra.s32 %s130_s14, 4  ;;  %s382_s17 = int_to_ptr.hbm [resolvable:$true] %s381_s17 }
  0x19   : > { %s383_s19 = scalar_lea.hbm %s382_s17, 16  ;;  %p385_p8 = pneg %p578_p3 }
  0x1a   : > { %p384_p5 = scmp.ne.s32.totalorder %s382_s17, %s383_s19  ;;  %s388_s26 = scalar_lea.hbm %s646_s1, 32 }
  0x1b   : > { %p389_p1 = scmp.lt.s32.totalorder %s382_s17, %s646_s1  ;;  %p390_p2 = scmp.lt.s32.totalorder %s388_s26, %s383_s19 }
  0x1c   : > { %p386_p9 = pnand %p385_p8, %p384_p5 }
  0x1d   : > { %p391_p7 = por %p390_p2, %p389_p1 }
  0x1e   : > { %p387_p10 = pneg %p386_p9 }
  0x20   : > { %p392_p0 = pnand %p391_p7, %p387_p10 }
  0x22   : > { %395 = shalt.err (!%p392_p0)
}
  0x23   : > { %s484_s27 = smov 256   ;;  %s485_s3 = smov 128  }
  0x24   : > { %s486_s4 = smov 8   ;;  %143 = sbr.rel (%p562_p13) target bundleno = 65 (0x41), region = 28 }
  0x25   : > { %321 = dma.hbm_to_vmem [thread:$0]  (!%p578_p3), %s130_s14, 256, %s132_s5, %s121_s16, %s484_s27, %s485_s3, %s486_s4  }
  0x29   : > { %456 = dma.done.wait (%p61_p4), [#allocation5], 16  }
  0x2a   : > { %458 = vsyncadd (%p61_p4), [#allocation5], 4294967280  ;;  %s603_s6 = sand.u32 1, %s473_s10  }
  0x2b   : > { %s297_s7 = sshll.u32 %s603_s6, 4  ;;  %s151_s8 = scalar_lea.sflag [#allocation3], %s603_s6 }
  0x2c   : > { %s154_s17 = scalar_lea.vmem [#allocation6], %s297_s7 }
  0x2d   : > { %460 = dma.done.wait (%p547_p6), %s151_s8, 256  }
  0x2e   : > { %462 = vsyncadd (%p547_p6), %s151_s8, 4294967040 }
  0x2f   : > { %160 = sfence }
  0x30   : > { %s177_s23 = sld [smem:[#allocation2]]  ;;  %s298_s5 = sshll.u32 %s603_s6, 3  ;;  %v180_v0 = vld [vmem:[%s154_s17] sm:$0xff]  ;;  %v301_v1 = vld [vmem:[%s154_s17 + $0x8] sm:$0xff] }
  0x31   : > { %s299_s28 = sld [smem:[#allocation2 + $0x1]]  ;;  %s303_s16 = sshll.u32 %s523_s13, 3 }
  0x32   : > { %s300_s14 = sld [smem:[#allocation2 + $0x2]]  ;;  %s202_s25 = scalar_lea.hbm %s647_s2, %s303_s16 }
  0x33   : > { %s176_s20 = scalar_lea.vmem [#allocation7], %s298_s5  ;;  %s206_s29 = sshll.u32 %s202_s25, 4  ;;  %s207_s29 = int_to_ptr.hbm [resolvable:$true] %s206_s29 }
  0x34   : > { %s204_s26 = sshll.u32 %s176_s20, 4  ;;  %s192_s13 = scalar_lea.sflag [#allocation4], %s603_s6  ;;  %s205_s26 = int_to_ptr.vmem [resolvable:$true] %s204_s26 }
  0x35   : > { %s425_s30 = sshra.s32 %s207_s29, 4  ;;  %s431_s7 = scalar_lea.hbm %s647_s2, 16  ;;  %s426_s30 = int_to_ptr.hbm [resolvable:$true] %s425_s30 }
  0x36   : > { %v181_v2 = vstv %s177_s23  ;;  %s427_s27 = scalar_lea.hbm %s426_s30, 8  ;;  %p432_p0 = scmp.lt.s32.totalorder %s426_s30, %s647_s2 }
  0x37   : > { %v182_v3 = vmul.f32 %v181_v2, %v180_v0  ;;  %v185_v4 = vstv %s299_s28  ;;  %p428_p4 = scmp.ne.s32.totalorder %s426_s30, %s427_s27  ;;  %p433_p3 = scmp.lt.s32.totalorder %s431_s7, %s427_s27 }
  0x38   : > { %v186_v5 = vmul.f32 %v301_v1, %v185_v4  ;;  %v188_v6 = vstv %s300_s14 }
  0x39   : > { %p429_p6 = pnand %p428_p4, %p554_p11  ;;  %p434_p5 = por %p433_p3, %p432_p0 }
  0x3a   : > { %v187_v7 = vadd.f32 %v186_v5, %v182_v3 }
  0x3b   : > { %p430_p13 = pneg %p429_p6 }
  0x3c   : > { %v189_v8 = vadd.f32 %v188_v6, %v187_v7 }
  0x3d   : > { %p435_p8 = pnand %p434_p5, %p430_p13 }
  0x3e   : > { %190 = vst [vmem:[%s176_s20] sm:$0xff] %v189_v8 }
  0x3f   : > { %438 = shalt.err (!%p435_p8)
}
  0x40   : > { %312 = dma.vmem_to_hbm [thread:$0]  (%p554_p11), %s205_s26, 128, %s207_s29, %s192_s13  }
  0x41 PF: > { %s218_s6 = sand.u32 1, %s469_s9   ;;  %p654_p9 = scmp.ge.s32.totalorder %s481_s12, 2 }
  0x42   : > { %s219_s23 = scalar_lea.sflag [#allocation4], %s218_s6 }
  0x43   : > { %p323_p10 = pnand %p654_p9, %p558_p12 }
  0x45   : > { %p324_p1 = pneg %p323_p10 }
  0x47   : > { %464 = dma.done.wait (%p324_p1), %s219_s23, 128  }
  0x48   : > { %466 = vsyncadd (%p324_p1), %s219_s23, 4294967168  ;;  %p16_p2 = scmp.ge.s32.totalorder %s527_s15, 4   ;;  %s655_s9 = smov %s473_s10 }
  0x49   : > { %s656_s10 = smov %s477_s11  ;;  %s657_s11 = smov %s539_s18 }
  0x4a   : > { %s658_s12 = smov %s527_s15  ;;  %18 = sbr.rel (!%p16_p2) target bundleno = 6 (0x6), region = 79 }
  0x4f   :  { %225 = vsyncpa [#allocation3], 1 }
  0x50   :  { %227 = vsyncpa [#allocation3 + $0x1], 1 }
  0x51   :  { %228 = vsyncpa [#allocation4], 1 }
  0x52   :  { %230 = vsyncpa [#allocation4 + $0x1], 1 }
  0x53   :  { %231 = vsyncpa [#allocation5], 1 }
  0x54   :  { %233 = vsyncpa [#allocation5 + $0x1], 1 }

</bundles_post_ra>
